<compile_context>
chip_gen: v6e
topology: v6e:2x2x1
jax: 0.10.0
libtpu: 0.0.40
codegen_flags: <defaults>
</compile_context>

<pallas_src>
from functools import partial

import jax
import jax.numpy as jnp
from jax.experimental import pallas as pl
from jax.experimental.pallas import tpu as pltpu


# ---------------------------------------------------------------------------
# Stage 1: conv matmul (lane-dense, transposed) + per-tile partial BN stats.
# ---------------------------------------------------------------------------
def _conv_stats_kernel(pT_ref, w_ref, y_ref, stats_ref):
    # pT_ref: (K, tile_m) im2col patches (transposed, M on lanes)
    # w_ref : (C_out, K) flattened conv weight (resident across the grid)
    # y_ref : (C_out, tile_m) conv output tile
    # stats_ref: (1, C_out, 2) partial [sum, sum_sq] for this tile
    y = jnp.dot(w_ref[...], pT_ref[...], preferred_element_type=jnp.float32)
    y_ref[...] = y
    s = jnp.sum(y, axis=1, keepdims=True)        # (C_out, 1)  lane reduce (XLU)
    sq = jnp.sum(y * y, axis=1, keepdims=True)   # (C_out, 1)
    stats_ref[0] = jnp.concatenate([s, sq], axis=1)   # (C_out, 2)


# ---------------------------------------------------------------------------
# Stage 2: normalize + ReLU with pre-folded scale/shift (1 mul + 1 add + max).
# ---------------------------------------------------------------------------
def _bn_relu_kernel(y_ref, scale_ref, shift_ref, o_ref):
    # y_ref: (C_out, tile_m); scale_ref / shift_ref: (C_out, 1)
    o_ref[...] = jnp.maximum(y_ref[...] * scale_ref[...] + shift_ref[...], 0.0)


# ---------------------------------------------------------------------------
# Wrapper helpers.
# ---------------------------------------------------------------------------
def _im2col_T(x, kh, kw, stride, padding):
    """x: (N, C_in, H, W) -> patches_T (C_in*kh*kw, N*H_out*W_out)."""
    n, c_in, h, w = x.shape
    xp = jnp.pad(x, ((0, 0), (0, 0), (padding, padding), (padding, padding)))
    h_out = (h + 2 * padding - kh) // stride + 1
    w_out = (w + 2 * padding - kw) // stride + 1
    cols = []
    for di in range(kh):
        for dj in range(kw):
            cols.append(
                xp[:, :, di:di + stride * h_out:stride, dj:dj + stride * w_out:stride]
            )  # each (N, C_in, H_out, W_out)
    p = jnp.stack(cols, axis=0)                    # (kh*kw, N, C_in, H_out, W_out)
    p = p.transpose(2, 0, 1, 3, 4)                 # (C_in, kh*kw, N, H_out, W_out)
    # K ordering (c_in, kh, kw) matches weight.reshape(C_out, C_in*kh*kw)
    return p.reshape(c_in * kh * kw, n * h_out * w_out), h_out, w_out


@partial(jax.jit, static_argnames=("stride", "padding", "eps", "tile_m"))
def conv_block_forward(x, weight, bias, gamma, beta, *,
                       stride=1, padding=1, eps=1e-5, tile_m=512):
    """x: (N, C_in, H, W) f32; weight: (C_out, C_in, kh, kw) (PyTorch layout)."""
    del bias  # conv bias cancels exactly under training-mode BatchNorm (mean subtraction)

    n, c_in, h, w = x.shape
    c_out, _, kh, kw = weight.shape

    patches_t, h_out, w_out = _im2col_T(x.astype(jnp.float32), kh, kw, stride, padding)
    k_dim, m = patches_t.shape

    # Pad M up to a tile multiple.  Zero columns contribute 0 to both sum and sum_sq
    # (no bias is added inside the kernel), so BN stats stay exact when dividing by m.
    num_tiles = max(1, (m + tile_m - 1) // tile_m)
    m_pad = num_tiles * tile_m
    if m_pad != m:
        patches_t = jnp.pad(patches_t, ((0, 0), (0, m_pad - m)))

    w_mat = weight.reshape(c_out, c_in * kh * kw).astype(jnp.float32)   # (C_out, K)

    compiler_params = pltpu.CompilerParams(
        dimension_semantics=("parallel",),    # M tiles independent -> megacore sharding
        vmem_limit_bytes=32 << 20,            # <= half of v7x's 64 MiB physical VMEM
    )

    # ---- Stage 1: tiled conv matmul + partial per-channel stats --------------------
    y_t, partial_stats = pl.pallas_call(
        _conv_stats_kernel,
        grid=(num_tiles,),
        in_specs=[
            pl.BlockSpec((k_dim, tile_m), lambda i: (0, i)),   # patches_T tile
            pl.BlockSpec((c_out, k_dim), lambda i: (0, 0)),    # weights (resident)
        ],
        out_specs=(
            pl.BlockSpec((c_out, tile_m), lambda i: (0, i)),   # y tile (lane-dense)
            pl.BlockSpec((1, c_out, 2), lambda i: (i, 0, 0)),  # per-tile partial stats
        ),
        out_shape=(
            jax.ShapeDtypeStruct((c_out, m_pad), jnp.float32),
            jax.ShapeDtypeStruct((num_tiles, c_out, 2), jnp.float32),
        ),
        compiler_params=compiler_params,
    )(patches_t, w_mat)

    # ---- Combine partials, fold gamma/beta into scale/shift (O(C_out) work) --------
    m_f = jnp.float32(m)
    sums = jnp.sum(partial_stats[:, :, 0], axis=0).reshape(c_out, 1)
    sumsq = jnp.sum(partial_stats[:, :, 1], axis=0).reshape(c_out, 1)
    mean = sums / m_f
    var = jnp.maximum(sumsq / m_f - mean * mean, 0.0)   # biased var, clamped
    inv_std = jax.lax.rsqrt(var + eps)
    scale = gamma.reshape(c_out, 1).astype(jnp.float32) * inv_std
    shift = beta.reshape(c_out, 1).astype(jnp.float32) - mean * scale

    # ---- Stage 2: tiled normalize + ReLU (output aliases the y buffer, P8) ---------
    out_t = pl.pallas_call(
        _bn_relu_kernel,
        grid=(num_tiles,),
        in_specs=[
            pl.BlockSpec((c_out, tile_m), lambda i: (0, i)),
            pl.BlockSpec((c_out, 1), lambda i: (0, 0)),
            pl.BlockSpec((c_out, 1), lambda i: (0, 0)),
        ],
        out_specs=pl.BlockSpec((c_out, tile_m), lambda i: (0, i)),
        out_shape=jax.ShapeDtypeStruct((c_out, m_pad), jnp.float32),
        input_output_aliases={0: 0},          # reuse y_t's HBM buffer for the output
        compiler_params=compiler_params,
    )(y_t, scale, shift)

    # (C_out, M) -> (C_out, N, H_out, W_out) -> NCHW
    out = out_t[:, :m].reshape(c_out, n, h_out, w_out).transpose(1, 0, 2, 3)
    return out


# ---------------------------------------------------------------------------
# Pure-JAX reference (matches the PyTorch module in training mode).
# ---------------------------------------------------------------------------
def _reference(x, weight, bias, gamma, beta, *, stride=1, padding=1, eps=1e-5):
    y = jax.lax.conv_general_dilated(
        x, weight, window_strides=(stride, stride),
        padding=[(padding, padding), (padding, padding)],
        dimension_numbers=("NCHW", "OIHW", "NCHW"),
    ) + bias.reshape(1, -1, 1, 1)
    mean = jnp.mean(y, axis=(0, 2, 3), keepdims=True)
    var = jnp.mean((y - mean) ** 2, axis=(0, 2, 3), keepdims=True)
    y = gamma.reshape(1, -1, 1, 1) * (y - mean) * jax.lax.rsqrt(var + eps) \
        + beta.reshape(1, -1, 1, 1)
    return jnp.maximum(y, 0.0)


if __name__ == "__main__":
    key = jax.random.PRNGKey(0)
    kx, kw_, kb = jax.random.split(key, 3)

    # ConvBlock(in_channels=4, out_channels=8, kernel_size=3, stride=1, padding=1)
    N, C_in, H, W = 2, 4, 16, 16
    C_out, KH, KW = 8, 3, 3

    x = jax.random.normal(kx, (N, C_in, H, W), dtype=jnp.float32)
    weight = 0.1 * jax.random.normal(kw_, (C_out, C_in, KH, KW), dtype=jnp.float32)
    bias = 0.05 * jax.random.normal(kb, (C_out,), dtype=jnp.float32)
    gamma = jnp.ones((C_out,), dtype=jnp.float32)   # BatchNorm2d default init
    beta = jnp.zeros((C_out,), dtype=jnp.float32)

    out = conv_block_forward(x, weight, bias, gamma, beta, stride=1, padding=1)
    out = jax.block_until_ready(out)

    ref = _reference(x, weight, bias, gamma, beta, stride=1, padding=1)
    assert out.shape == (N, C_out, H, W)
    assert jnp.allclose(out, ref, atol=1e-4, rtol=1e-4)

    print("KERNEL_OK")
</pallas_src>

<mosaic_0001>
module attributes {stable_mosaic.version = 11 : i64} {
  func.func @_conv_stats_kernel(%arg0: i32, %arg1: memref<36x512xf32, #tpu.memory_space<vmem>>, %arg2: memref<8x36xf32, #tpu.memory_space<vmem>>, %arg3: memref<8x512xf32, #tpu.memory_space<vmem>>, %arg4: memref<1x8x2xf32, #tpu.memory_space<vmem>>) attributes {dimension_semantics = [#tpu.dimension_semantics<parallel>], iteration_bounds = array<i64: 1>, scalar_prefetch = 0 : i64, scratch_operands = 0 : i64, tpu.core_type = #tpu.core_type<tc>, window_params = [{transform_indices = @transform_0, window_bounds = array<i64: 36, 512>}, {pipeline_mode = #tpu.pipeline_mode<synchronous>, transform_indices = @transform_1, window_bounds = array<i64: 8, 36>}, {transform_indices = @transform_2, window_bounds = array<i64: 8, 512>}, {transform_indices = @transform_3, window_bounds = array<i64: 1, 8, 2>}]} {
    %c0 = arith.constant 0 : index
    %c0_0 = arith.constant 0 : index
    %0 = vector.load %arg2[%c0, %c0_0] : memref<8x36xf32, #tpu.memory_space<vmem>>, vector<8x36xf32>
    %c0_1 = arith.constant 0 : index
    %c0_2 = arith.constant 0 : index
    %1 = vector.load %arg1[%c0_1, %c0_2] : memref<36x512xf32, #tpu.memory_space<vmem>>, vector<36x512xf32>
    %cst = arith.constant dense<0.000000e+00> : vector<8x512xf32>
    %2 = tpu.matmul %0, %1, %cst {dimension_numbers = #tpu.dot_dimension_numbers<[1], [0], [0], [1], [0, 0, 1, 1], [], []>} : vector<8x36xf32>, vector<36x512xf32>, vector<8x512xf32> -> vector<8x512xf32>
    %c0_3 = arith.constant 0 : index
    %c0_4 = arith.constant 0 : index
    %3 = vector.load %arg3[%c0_3, %c0_4] : memref<8x512xf32, #tpu.memory_space<vmem>>, vector<8x512xf32>
    tpu.vector_store %arg3[%c0_3, %c0_4], %2 {strides = array<i32>} : memref<8x512xf32, #tpu.memory_space<vmem>>, vector<8x512xf32>,
    %cst_5 = arith.constant dense<0.000000e+00> : vector<8xf32>
    %4 = vector.multi_reduction <add>, %2, %cst_5 [1] : vector<8x512xf32> to vector<8xf32>
    %5 = vector.shape_cast %4 : vector<8xf32> to vector<8x1xf32>
    %6 = arith.mulf %2, %2 : vector<8x512xf32>
    %cst_6 = arith.constant dense<0.000000e+00> : vector<8xf32>
    %7 = vector.multi_reduction <add>, %6, %cst_6 [1] : vector<8x512xf32> to vector<8xf32>
    %8 = vector.shape_cast %7 : vector<8xf32> to vector<8x1xf32>
    %9 = tpu.concatenate %5, %8 in 1 : vector<8x1xf32>, vector<8x1xf32> -> vector<8x2xf32>
    %c0_7 = arith.constant 0 : index
    %c0_8 = arith.constant 0 : index
    %c0_9 = arith.constant 0 : index
    %10 = vector.load %arg4[%c0_7, %c0_8, %c0_9] : memref<1x8x2xf32, #tpu.memory_space<vmem>>, vector<1x8x2xf32>
    %11 = vector.shape_cast %10 : vector<1x8x2xf32> to vector<8x2xf32>
    %12 = vector.shape_cast %9 : vector<8x2xf32> to vector<1x8x2xf32>
    tpu.vector_store %arg4[%c0_7, %c0_8, %c0_9], %12 {strides = array<i32>} : memref<1x8x2xf32, #tpu.memory_space<vmem>>, vector<1x8x2xf32>,
    return
  }
  func.func @transform_0(%arg0: i32) -> (i32, i32) {
    %c0_i32 = arith.constant 0 : i32
    %c0_i32_0 = arith.constant 0 : i32
    return %c0_i32, %arg0 : i32, i32
  }
  func.func @transform_1(%arg0: i32) -> (i32, i32) {
    %c0_i32 = arith.constant 0 : i32
    %c0_i32_0 = arith.constant 0 : i32
    %c0_i32_1 = arith.constant 0 : i32
    return %c0_i32, %c0_i32_0 : i32, i32
  }
  func.func @transform_2(%arg0: i32) -> (i32, i32) {
    %c0_i32 = arith.constant 0 : i32
    %c0_i32_0 = arith.constant 0 : i32
    return %c0_i32, %arg0 : i32, i32
  }
  func.func @transform_3(%arg0: i32) -> (i32, i32, i32) {
    %c0_i32 = arith.constant 0 : i32
    %c0_i32_0 = arith.constant 0 : i32
    %c0_i32_1 = arith.constant 0 : i32
    return %arg0, %c0_i32, %c0_i32_0 : i32, i32, i32
  }
}

module attributes {stable_mosaic.version = 11 : i64} {
  func.func @_bn_relu_kernel(%arg0: i32, %arg1: memref<8x512xf32, #tpu.memory_space<vmem>>, %arg2: memref<8x1xf32, #tpu.memory_space<vmem>>, %arg3: memref<8x1xf32, #tpu.memory_space<vmem>>, %arg4: memref<8x512xf32, #tpu.memory_space<vmem>>) attributes {dimension_semantics = [#tpu.dimension_semantics<parallel>], iteration_bounds = array<i64: 1>, scalar_prefetch = 0 : i64, scratch_operands = 0 : i64, tpu.core_type = #tpu.core_type<tc>, window_params = [{transform_indices = @transform_0, window_bounds = array<i64: 8, 512>}, {pipeline_mode = #tpu.pipeline_mode<synchronous>, transform_indices = @transform_1, window_bounds = array<i64: 8, 1>}, {pipeline_mode = #tpu.pipeline_mode<synchronous>, transform_indices = @transform_2, window_bounds = array<i64: 8, 1>}, {transform_indices = @transform_3, window_bounds = array<i64: 8, 512>}]} {
    %c0 = arith.constant 0 : index
    %c0_0 = arith.constant 0 : index
    %0 = vector.load %arg1[%c0, %c0_0] : memref<8x512xf32, #tpu.memory_space<vmem>>, vector<8x512xf32>
    %c0_1 = arith.constant 0 : index
    %c0_2 = arith.constant 0 : index
    %1 = vector.load %arg2[%c0_1, %c0_2] : memref<8x1xf32, #tpu.memory_space<vmem>>, vector<8x1xf32>
    %2 = vector.broadcast %1 : vector<8x1xf32> to vector<8x512xf32>
    %3 = arith.mulf %0, %2 : vector<8x512xf32>
    %c0_3 = arith.constant 0 : index
    %c0_4 = arith.constant 0 : index
    %4 = vector.load %arg3[%c0_3, %c0_4] : memref<8x1xf32, #tpu.memory_space<vmem>>, vector<8x1xf32>
    %5 = vector.broadcast %4 : vector<8x1xf32> to vector<8x512xf32>
    %6 = arith.addf %3, %5 : vector<8x512xf32>
    %cst = arith.constant 0.000000e+00 : f32
    %7 = vector.broadcast %cst : f32 to vector<8x512xf32>
    %8 = arith.maximumf %6, %7 : vector<8x512xf32>
    %c0_5 = arith.constant 0 : index
    %c0_6 = arith.constant 0 : index
    %9 = vector.load %arg4[%c0_5, %c0_6] : memref<8x512xf32, #tpu.memory_space<vmem>>, vector<8x512xf32>
    tpu.vector_store %arg4[%c0_5, %c0_6], %8 {strides = array<i32>} : memref<8x512xf32, #tpu.memory_space<vmem>>, vector<8x512xf32>,
    return
  }
  func.func @transform_0(%arg0: i32) -> (i32, i32) {
    %c0_i32 = arith.constant 0 : i32
    %c0_i32_0 = arith.constant 0 : i32
    return %c0_i32, %arg0 : i32, i32
  }
  func.func @transform_1(%arg0: i32) -> (i32, i32) {
    %c0_i32 = arith.constant 0 : i32
    %c0_i32_0 = arith.constant 0 : i32
    %c0_i32_1 = arith.constant 0 : i32
    return %c0_i32, %c0_i32_0 : i32, i32
  }
  func.func @transform_2(%arg0: i32) -> (i32, i32) {
    %c0_i32 = arith.constant 0 : i32
    %c0_i32_0 = arith.constant 0 : i32
    %c0_i32_1 = arith.constant 0 : i32
    return %c0_i32, %c0_i32_0 : i32, i32
  }
  func.func @transform_3(%arg0: i32) -> (i32, i32) {
    %c0_i32 = arith.constant 0 : i32
    %c0_i32_0 = arith.constant 0 : i32
    return %c0_i32, %arg0 : i32, i32
  }
}

</mosaic_0001>

<bundles_post_ra>
// kernel: conv_block_forward.3
= control target key start
LH: loop header
LB: loop body
LE: loop exit
PB: predicated region body
PF: predicated region fallthrough
CT: control target
= control target key end

     0   :  { %v52_v0 = vmov 0   ;;  %s103_s1 = inlined_call_operand.vmem [shape: f32[8,1], index: 1, kind: input, shape index: {}]   ;;  %s104_s2 = inlined_call_operand.vmem [shape: f32[8,1], index: 2, kind: input, shape index: {}]   ;;  %s105_s0 = inlined_call_operand.vmem [shape: f32[8,512], index: 0, kind: input, shape index: {}, may-alias: {0,3}]   ;;  %s106_s3 = inlined_call_operand.vmem [shape: f32[8,512], index: 3, kind: output, shape index: {}, may-alias: {0,3}]  }
   0x1   :  { %51 = vset.pattern.permute.xlu0 %v52_v0  ;;  %v18_v1 = vld [vmem:[%s103_s1] sm:$0xff]  ;;  %v15_v5 = vld [vmem:[%s105_s0 + $0x8] sm:$0xff]  ;;  %v16_v6 = vld [vmem:[%s105_s0 + $0x10] sm:$0xff] }
   0x2   :  { %21 = vperm.xlu0 %51, %v18_v1   ;;  %v28_v2 = vld [vmem:[%s104_s2] sm:$0xff]  ;;  %v17_v7 = vld [vmem:[%s105_s0 + $0x18] sm:$0xff] }
   0x3   :  { %v14_v3 = vld [vmem:[%s105_s0] sm:$0xff] }
   0x6   :  { %31 = vperm.xlu0 %51, %v28_v2  }
  0x7d   :  { %v22_v4 = vpop.permute.xlu0 %21 }
  0x7e   :  { %v24_v8 = vmul.f32 %v22_v4, %v14_v3  ;;  %v25_v9 = vmul.f32 %v22_v4, %v15_v5  ;;  %v26_v10 = vmul.f32 %v22_v4, %v16_v6  ;;  %v27_v11 = vmul.f32 %v22_v4, %v17_v7 }
  0x81   :  { %v32_v12 = vpop.permute.xlu0 %31 }
  0x82   :  { %v34_v13 = vadd.f32 %v32_v12, %v24_v8  ;;  %v35_v14 = vadd.f32 %v32_v12, %v25_v9  ;;  %v36_v15 = vadd.f32 %v32_v12, %v26_v10  ;;  %v37_v16 = vadd.f32 %v32_v12, %v27_v11 }
  0x84   :  { %v38_v17 = vmax.f32 %v34_v13, 0.0  ;;  %v39_v18 = vmax.f32 %v35_v14, 0.0  ;;  %v40_v19 = vmax.f32 %v36_v15, 0.0  ;;  %v41_v20 = vmax.f32 %v37_v16, 0.0 }
  0x86   :  { %42 = vst [vmem:[%s106_s3] sm:$0xff] %v38_v17  ;;  %43 = vst [vmem:[%s106_s3 + $0x8] sm:$0xff] %v39_v18 }
  0x87   :  { %44 = vst [vmem:[%s106_s3 + $0x10] sm:$0xff] %v40_v19  ;;  %45 = vst [vmem:[%s106_s3 + $0x18] sm:$0xff] %v41_v20 }

// kernel: conv_block_forward.2
= control target key start
LH: loop header
LB: loop body
LE: loop exit
PB: predicated region body
PF: predicated region fallthrough
CT: control target
= control target key end

     0   :  { %vm38_vm0 = vcmask 1043456   ;;  %v230_v3 = vmov 0.0   ;;  %vm34_vm1 = vcmask 293888   ;;  %vm211_vm2 = vcmask 7168   ;;  %s333_s0 = inlined_call_operand.vmem [shape: f32[36,512], index: 0, kind: input, shape index: {}]   ;;  %s334_s1 = inlined_call_operand.vmem [shape: f32[8,36], index: 1, kind: input, shape index: {}]   ;;  %s335_s2 = inlined_call_operand.vmem [shape: f32[8,512], index: 2, kind: output, shape index: {0}]   ;;  %s336_s3 = inlined_call_operand.vmem [shape: f32[1,8,2], index: 3, kind: output, shape index: {1}]  }
   0x1   :  { %v31_v0 = vld [vmem:[%s333_s0 + $0x88] sm:$0xf]  ;;  %v30_v1 = vld [vmem:[%s333_s0 + $0x80] sm:$0xf]  ;;  %115 = vmatprep.mubr.f32.mxu0 %v230_v3  ;;  %186 = vmatprep.mubr.f32.mxu1 %v230_v3  ;;  %v33_v4 = vld [vmem:[%s333_s0 + $0x98] sm:$0xf] }
   0x2   :  { %v27_v2 = vld [vmem:[%s333_s0 + $0x68] sm:$0xff]  ;;  %223 = vmatprep.subr.msk.mxu0 %vm38_vm0, %v31_v0  ;;  %v26_v5 = vld [vmem:[%s333_s0 + $0x60] sm:$0xff]  ;;  %v32_v6 = vld [vmem:[%s333_s0 + $0x90] sm:$0xf]  ;;  %226 = vmatprep.subr.msk.mxu1 %vm38_vm0, %v33_v4  ;;  %vm213_vm3 = vcmask 15360  }
   0x3   :  { %224 = vmatpush1.msk.msra.mxu0 %vm38_vm0, %v30_v1  ;;  %v23_v7 = vld [vmem:[%s333_s0 + $0x48] sm:$0xff]  ;;  %v29_v8 = vld [vmem:[%s333_s0 + $0x78] sm:$0xff]  ;;  %227 = vmatpush1.msk.msra.mxu1 %vm38_vm0, %v32_v6  ;;  %v22_v9 = vld [vmem:[%s333_s0 + $0x40] sm:$0xff] }
   0x4   :  { %75 = vmatprep.subr.mxu0 %v27_v2  ;;  %v28_v10 = vld [vmem:[%s333_s0 + $0x70] sm:$0xff]  ;;  %v25_v11 = vld [vmem:[%s333_s0 + $0x58] sm:$0xff]  ;;  %146 = vmatprep.subr.mxu1 %v29_v8  ;;  %v19_v12 = vld [vmem:[%s333_s0 + $0x28] sm:$0xff] }
   0x5   :  { %76 = vmatpush1.msra.mxu0 %v26_v5  ;;  %v24_v13 = vld [vmem:[%s333_s0 + $0x50] sm:$0xff]  ;;  %147 = vmatpush1.msra.mxu1 %v28_v10  ;;  %v18_v14 = vld [vmem:[%s333_s0 + $0x20] sm:$0xff]  ;;  %v21_v15 = vld [vmem:[%s333_s0 + $0x38] sm:$0xff] }
   0x6   :  { %77 = vmatprep.subr.mxu0 %v23_v7  ;;  %148 = vmatprep.subr.mxu1 %v25_v11  ;;  %v15_v16 = vld [vmem:[%s333_s0 + $0x8] sm:$0xff]  ;;  %v20_v17 = vld [vmem:[%s333_s0 + $0x30] sm:$0xff]  ;;  %v14_v18 = vld [vmem:[%s333_s0] sm:$0xff] }
   0x7   :  { %78 = vmatpush1.msra.mxu0 %v22_v9  ;;  %149 = vmatpush1.msra.mxu1 %v24_v13  ;;  %v17_v19 = vld [vmem:[%s333_s0 + $0x18] sm:$0xff]  ;;  %v13_v20 = vld [vmem:[%s334_s1] sm:$0xff]  ;;  %v16_v21 = vld [vmem:[%s333_s0 + $0x10] sm:$0xff] }
   0x8   :  { %79 = vmatprep.subr.mxu0 %v19_v12  ;;  %150 = vmatprep.subr.mxu1 %v21_v15 }
   0x9   :  { %80 = vmatpush1.msra.mxu0 %v18_v14  ;;  %151 = vmatpush1.msra.mxu1 %v20_v17 }
   0xa   :  { %81 = vmatprep.subr.mxu0 %v15_v16  ;;  %152 = vmatprep.subr.mxu1 %v17_v19 }
   0xb   :  { %82 = vmatpush1.msra.mxu0 %v14_v18  ;;  %153 = vmatpush1.msra.mxu1 %v16_v21 }
   0xc   :  { %225 = vmatmul.mubr.msk.f32.vlgmr.msra.gmra.mxu0 %vm34_vm1, %v13_v20  ;;  %228 = vmatmul.mubr.msk.f32.vlgmr.msra.gmra.mxu1 %vm34_vm1, %v13_v20 }
  0xcc   :  { %v117_v22 = vpop.f32.mrf.mxu0  ;;  %v188_v23 = vpop.f32.mrf.mxu1 }
  0xcd   :  { %193 = vst [vmem:[%s335_s2] sm:$0xff] %v117_v22  ;;  %195 = vst [vmem:[%s335_s2 + $0x10] sm:$0xff] %v188_v23  ;;  %v202_v25 = vmul.f32 %v117_v22, %v117_v22  ;;  %v204_v28 = vmul.f32 %v188_v23, %v188_v23 }
  0xce   :  { %v119_v24 = vpop.f32.mrf.mxu0  ;;  %v190_v29 = vpop.f32.mrf.mxu1 }
  0xcf   :  { %194 = vst [vmem:[%s335_s2 + $0x8] sm:$0xff] %v119_v24  ;;  %v197_v26 = vadd.f32 %v119_v24, %v117_v22  ;;  %v203_v27 = vmul.f32 %v119_v24, %v119_v24  ;;  %196 = vst [vmem:[%s335_s2 + $0x18] sm:$0xff] %v190_v29  ;;  %v205_v34 = vmul.f32 %v190_v29, %v190_v29 }
  0xd1   :  { %v206_v30 = vadd.f32 %v203_v27, %v202_v25  ;;  %v198_v31 = vadd.f32 %v197_v26, %v188_v23 }
  0xd3   :  { %v199_v32 = vadd.f32 %v198_v31, %v190_v29  ;;  %v207_v33 = vadd.f32 %v206_v30, %v204_v28 }
  0xd5   :  { %200 = vadd.xlane.f32.xlu0 %v199_v32  ;;  %v208_v35 = vadd.f32 %v207_v33, %v205_v34 }
  0xd9   :  { %209 = vadd.xlane.f32.xlu0 %v208_v35 }
 0x15e   :  { %v201_v36 = vpop.xlane.xlu0 %200 }
 0x162   :  { %v210_v37 = vpop.xlane.xlu0 %209 }
 0x163   :  { %v212_v38 = vsel %vm211_vm2, %v201_v36, %v210_v37 }
 0x164   :  { %214 = vst.msk [vmem:[%s336_s3] sm:$0xff] %vm213_vm3, %v212_v38 }

</bundles_post_ra>
